<compile_context>
chip_gen: v7x
topology: tpu7x:2x2x1
jax: 0.10.0
libtpu: 0.0.40
codegen_flags: <defaults>
</compile_context>

<pallas_src>
import functools

import jax
import jax.numpy as jnp
from jax.experimental import pallas as pl
from jax.experimental.pallas import tpu as pltpu


def _elu(x):
    # ELU(alpha=1): x if x > 0 else exp(x) - 1.
    # exp() is evaluated on min(x, 0) so large positives never hit the EUP with
    # huge arguments; the negative branch matches PyTorch ELU to f32 tolerance.
    return jnp.where(x > 0, x, jnp.exp(jnp.minimum(x, 0.0)) - 1.0)


def critic_kernel(xT_ref, w1_ref, b1_ref, w2_ref, b2_ref, w3_ref, b3_ref, o_ref):
    # Shapes (padded):
    #   xT_ref : (in_p,  blk)   batch on lanes
    #   w1_ref : (hid_p, in_p)  PyTorch (out, in) layout
    #   b1_ref : (hid_p, 1)
    #   w2_ref : (hid_p, hid_p)
    #   b2_ref : (hid_p, 1)
    #   w3_ref : (hid_p, 1)     final-layer weights as a column
    #   b3_ref : (1, 1)
    #   o_ref  : (1, blk)       lane-dense output row
    xT = xT_ref[...]

    h = jnp.dot(w1_ref[...], xT, preferred_element_type=jnp.float32) + b1_ref[...]
    h = _elu(h)

    h = jnp.dot(w2_ref[...], h, preferred_element_type=jnp.float32) + b2_ref[...]
    h = _elu(h)

    # Final Linear(hidden, 1): VPU multiply + cross-sublane reduce instead of an
    # N=1 MXU matmul; result is already lane-dense (1, blk).
    o = jnp.sum(h * w3_ref[...], axis=0, keepdims=True) + b3_ref[...]
    o_ref[...] = o.astype(o_ref.dtype)


def _round_up(x, m):
    return ((x + m - 1) // m) * m


@functools.partial(jax.jit, static_argnames=("block_b",))
def critic_forward(state_features, actions, params, *, block_b=256):
    """Forward pass of Critic. `actions` is ignored, mirroring the PyTorch module.

    params are in PyTorch nn.Linear layout:
      w1 (hidden, in_dim), b1 (hidden,), w2 (hidden, hidden), b2 (hidden,),
      w3 (1, hidden), b3 (1,)
    """
    del actions
    w1, b1, w2, b2, w3, b3 = params
    B, in_dim = state_features.shape
    hidden = w1.shape[0]

    # Guard against passing transposed weights.
    assert w1.shape == (hidden, in_dim), w1.shape
    assert b1.shape == (hidden,), b1.shape
    assert w2.shape == (hidden, hidden), w2.shape
    assert b2.shape == (hidden,), b2.shape
    assert w3.shape == (1, hidden), w3.shape
    assert b3.shape == (1,), b3.shape

    # Pad feature dims to the 128-lane width; pad batch to a lane-dense tile.
    in_p = _round_up(in_dim, 128)
    hid_p = _round_up(hidden, 128)
    blk = _round_up(min(block_b, _round_up(B, 128)), 128)
    B_p = _round_up(B, blk)
    grid = (B_p // blk,)

    # Wrapper-side layout plumbing (zero padding keeps the math exact).
    xT = jnp.pad(state_features.T, ((0, in_p - in_dim), (0, B_p - B)))
    w1_p = jnp.pad(w1, ((0, hid_p - hidden), (0, in_p - in_dim)))
    b1_p = jnp.pad(b1, (0, hid_p - hidden)).reshape(hid_p, 1)
    w2_p = jnp.pad(w2, ((0, hid_p - hidden), (0, hid_p - hidden)))
    b2_p = jnp.pad(b2, (0, hid_p - hidden)).reshape(hid_p, 1)
    w3_p = jnp.pad(w3, ((0, 0), (0, hid_p - hidden))).T  # (hid_p, 1)
    b3_p = b3.reshape(1, 1)

    resident = lambda shape: pl.BlockSpec(shape, lambda i: (0, 0))

    out = pl.pallas_call(
        critic_kernel,
        out_shape=jax.ShapeDtypeStruct((1, B_p), jnp.float32),
        grid_spec=pl.GridSpec(
            grid=grid,
            in_specs=[
                pl.BlockSpec((in_p, blk), lambda i: (0, i)),  # x^T tile over batch lanes
                resident((hid_p, in_p)),                      # w1 (resident)
                resident((hid_p, 1)),                         # b1
                resident((hid_p, hid_p)),                     # w2 (resident)
                resident((hid_p, 1)),                         # b2
                resident((hid_p, 1)),                         # w3 column
                resident((1, 1)),                             # b3
            ],
            out_specs=pl.BlockSpec((1, blk), lambda i: (0, i)),
        ),
        compiler_params=pltpu.CompilerParams(
            dimension_semantics=("parallel",),
        ),
    )(xT, w1_p, b1_p, w2_p, b2_p, w3_p, b3_p)

    # Back to the module's (B, 1) output.
    return out[:, :B].T


def init_critic_params(key, in_dim, hidden_size):
    # Deterministic synthetic init, PyTorch nn.Linear (out, in) layout.
    k1, k2, k3, k4, k5 = jax.random.split(key, 5)
    scale = 0.1
    w1 = scale * jax.random.normal(k1, (hidden_size, in_dim), jnp.float32)
    b1 = 0.01 * jax.random.normal(k4, (hidden_size,), jnp.float32)
    w2 = scale * jax.random.normal(k2, (hidden_size, hidden_size), jnp.float32)
    b2 = 0.01 * jax.random.normal(k5, (hidden_size,), jnp.float32)
    w3 = scale * jax.random.normal(k3, (1, hidden_size), jnp.float32)
    b3 = jnp.zeros((1,), jnp.float32)
    return (w1, b1, w2, b2, w3, b3)


def critic_reference(state_features, params):
    w1, b1, w2, b2, w3, b3 = params
    h = _elu(state_features @ w1.T + b1)
    h = _elu(h @ w2.T + b2)
    return h @ w3.T + b3


if __name__ == "__main__":
    key = jax.random.PRNGKey(0)
    k_x, k_a, k_p = jax.random.split(key, 3)

    B, in_dim, hidden = 16, 30, 32
    state_features = jax.random.normal(k_x, (B, in_dim), jnp.float32)
    actions = jax.random.normal(k_a, (B, 4), jnp.float32)  # unused, mirrors signature

    params = init_critic_params(k_p, in_dim, hidden)

    out = critic_forward(state_features, actions, params)
    out = jax.block_until_ready(out)

    ref = critic_reference(state_features, params)
    assert out.shape == (B, 1), out.shape
    assert jnp.allclose(out, ref, atol=1e-5, rtol=1e-5), "mismatch vs reference"

    print("KERNEL_OK")
</pallas_src>

<mosaic_0001>
module attributes {stable_mosaic.version = 11 : i64} {
  func.func @critic_kernel(%arg0: i32, %arg1: memref<128x128xf32, #tpu.memory_space<vmem>>, %arg2: memref<128x128xf32, #tpu.memory_space<vmem>>, %arg3: memref<128x1xf32, #tpu.memory_space<vmem>>, %arg4: memref<128x128xf32, #tpu.memory_space<vmem>>, %arg5: memref<128x1xf32, #tpu.memory_space<vmem>>, %arg6: memref<128x1xf32, #tpu.memory_space<vmem>>, %arg7: memref<1x1xf32, #tpu.memory_space<vmem>>, %arg8: memref<1x128xf32, #tpu.memory_space<vmem>>) attributes {dimension_semantics = [#tpu.dimension_semantics<parallel>], iteration_bounds = array<i64: 1>, scalar_prefetch = 0 : i64, scratch_operands = 0 : i64, tpu.core_type = #tpu.core_type<tc>, window_params = [{transform_indices = @transform_0, window_bounds = array<i64: 128, 128>}, {pipeline_mode = #tpu.pipeline_mode<synchronous>, transform_indices = @transform_1, window_bounds = array<i64: 128, 128>}, {pipeline_mode = #tpu.pipeline_mode<synchronous>, transform_indices = @transform_2, window_bounds = array<i64: 128, 1>}, {pipeline_mode = #tpu.pipeline_mode<synchronous>, transform_indices = @transform_3, window_bounds = array<i64: 128, 128>}, {pipeline_mode = #tpu.pipeline_mode<synchronous>, transform_indices = @transform_4, window_bounds = array<i64: 128, 1>}, {pipeline_mode = #tpu.pipeline_mode<synchronous>, transform_indices = @transform_5, window_bounds = array<i64: 128, 1>}, {pipeline_mode = #tpu.pipeline_mode<synchronous>, transform_indices = @transform_6, window_bounds = array<i64: 1, 1>}, {transform_indices = @transform_7, window_bounds = array<i64: 1, 128>}]} {
    %c0 = arith.constant 0 : index
    %c0_0 = arith.constant 0 : index
    %0 = vector.load %arg1[%c0, %c0_0] : memref<128x128xf32, #tpu.memory_space<vmem>>, vector<128x128xf32>
    %c0_1 = arith.constant 0 : index
    %c0_2 = arith.constant 0 : index
    %1 = vector.load %arg2[%c0_1, %c0_2] : memref<128x128xf32, #tpu.memory_space<vmem>>, vector<128x128xf32>
    %cst = arith.constant dense<0.000000e+00> : vector<128x128xf32>
    %2 = tpu.matmul %1, %0, %cst {dimension_numbers = #tpu.dot_dimension_numbers<[1], [0], [0], [1], [0, 0, 1, 1], [], []>} : vector<128x128xf32>, vector<128x128xf32>, vector<128x128xf32> -> vector<128x128xf32>
    %c0_3 = arith.constant 0 : index
    %c0_4 = arith.constant 0 : index
    %3 = vector.load %arg3[%c0_3, %c0_4] : memref<128x1xf32, #tpu.memory_space<vmem>>, vector<128x1xf32>
    %4 = vector.broadcast %3 : vector<128x1xf32> to vector<128x128xf32>
    %5 = arith.addf %2, %4 : vector<128x128xf32>
    %cst_5 = arith.constant 0.000000e+00 : f32
    %6 = vector.broadcast %cst_5 : f32 to vector<128x128xf32>
    %7 = arith.cmpf ogt, %5, %6 : vector<128x128xf32>
    %cst_6 = arith.constant 0.000000e+00 : f32
    %8 = vector.broadcast %cst_6 : f32 to vector<128x128xf32>
    %9 = arith.minimumf %5, %8 : vector<128x128xf32>
    %10 = math.exp %9 : vector<128x128xf32>
    %cst_7 = arith.constant 1.000000e+00 : f32
    %11 = vector.broadcast %cst_7 : f32 to vector<128x128xf32>
    %12 = arith.subf %10, %11 : vector<128x128xf32>
    %13 = arith.select %7, %5, %12 : vector<128x128xi1>, vector<128x128xf32>
    %c0_8 = arith.constant 0 : index
    %c0_9 = arith.constant 0 : index
    %14 = vector.load %arg4[%c0_8, %c0_9] : memref<128x128xf32, #tpu.memory_space<vmem>>, vector<128x128xf32>
    %cst_10 = arith.constant dense<0.000000e+00> : vector<128x128xf32>
    %15 = tpu.matmul %14, %13, %cst_10 {dimension_numbers = #tpu.dot_dimension_numbers<[1], [0], [0], [1], [0, 0, 1, 1], [], []>} : vector<128x128xf32>, vector<128x128xf32>, vector<128x128xf32> -> vector<128x128xf32>
    %c0_11 = arith.constant 0 : index
    %c0_12 = arith.constant 0 : index
    %16 = vector.load %arg5[%c0_11, %c0_12] : memref<128x1xf32, #tpu.memory_space<vmem>>, vector<128x1xf32>
    %17 = vector.broadcast %16 : vector<128x1xf32> to vector<128x128xf32>
    %18 = arith.addf %15, %17 : vector<128x128xf32>
    %cst_13 = arith.constant 0.000000e+00 : f32
    %19 = vector.broadcast %cst_13 : f32 to vector<128x128xf32>
    %20 = arith.cmpf ogt, %18, %19 : vector<128x128xf32>
    %cst_14 = arith.constant 0.000000e+00 : f32
    %21 = vector.broadcast %cst_14 : f32 to vector<128x128xf32>
    %22 = arith.minimumf %18, %21 : vector<128x128xf32>
    %23 = math.exp %22 : vector<128x128xf32>
    %cst_15 = arith.constant 1.000000e+00 : f32
    %24 = vector.broadcast %cst_15 : f32 to vector<128x128xf32>
    %25 = arith.subf %23, %24 : vector<128x128xf32>
    %26 = arith.select %20, %18, %25 : vector<128x128xi1>, vector<128x128xf32>
    %c0_16 = arith.constant 0 : index
    %c0_17 = arith.constant 0 : index
    %27 = vector.load %arg6[%c0_16, %c0_17] : memref<128x1xf32, #tpu.memory_space<vmem>>, vector<128x1xf32>
    %28 = vector.broadcast %27 : vector<128x1xf32> to vector<128x128xf32>
    %29 = arith.mulf %26, %28 : vector<128x128xf32>
    %cst_18 = arith.constant dense<0.000000e+00> : vector<128xf32>
    %30 = vector.multi_reduction <add>, %29, %cst_18 [0] : vector<128x128xf32> to vector<128xf32>
    %31 = vector.shape_cast %30 : vector<128xf32> to vector<1x128xf32>
    %c0_19 = arith.constant 0 : index
    %c0_20 = arith.constant 0 : index
    %32 = vector.load %arg7[%c0_19, %c0_20] : memref<1x1xf32, #tpu.memory_space<vmem>>, vector<1x1xf32>
    %33 = vector.broadcast %32 : vector<1x1xf32> to vector<1x128xf32>
    %34 = arith.addf %31, %33 : vector<1x128xf32>
    %c0_21 = arith.constant 0 : index
    %c0_22 = arith.constant 0 : index
    %35 = vector.load %arg8[%c0_21, %c0_22] : memref<1x128xf32, #tpu.memory_space<vmem>>, vector<1x128xf32>
    tpu.vector_store %arg8[%c0_21, %c0_22], %34 {strides = array<i32>} : memref<1x128xf32, #tpu.memory_space<vmem>>, vector<1x128xf32>,
    return
  }
  func.func @transform_0(%arg0: i32) -> (i32, i32) {
    %c0_i32 = arith.constant 0 : i32
    %c0_i32_0 = arith.constant 0 : i32
    return %c0_i32, %arg0 : i32, i32
  }
  func.func @transform_1(%arg0: i32) -> (i32, i32) {
    %c0_i32 = arith.constant 0 : i32
    %c0_i32_0 = arith.constant 0 : i32
    %c0_i32_1 = arith.constant 0 : i32
    return %c0_i32, %c0_i32_0 : i32, i32
  }
  func.func @transform_2(%arg0: i32) -> (i32, i32) {
    %c0_i32 = arith.constant 0 : i32
    %c0_i32_0 = arith.constant 0 : i32
    %c0_i32_1 = arith.constant 0 : i32
    return %c0_i32, %c0_i32_0 : i32, i32
  }
  func.func @transform_3(%arg0: i32) -> (i32, i32) {
    %c0_i32 = arith.constant 0 : i32
    %c0_i32_0 = arith.constant 0 : i32
    %c0_i32_1 = arith.constant 0 : i32
    return %c0_i32, %c0_i32_0 : i32, i32
  }
  func.func @transform_4(%arg0: i32) -> (i32, i32) {
    %c0_i32 = arith.constant 0 : i32
    %c0_i32_0 = arith.constant 0 : i32
    %c0_i32_1 = arith.constant 0 : i32
    return %c0_i32, %c0_i32_0 : i32, i32
  }
  func.func @transform_5(%arg0: i32) -> (i32, i32) {
    %c0_i32 = arith.constant 0 : i32
    %c0_i32_0 = arith.constant 0 : i32
    %c0_i32_1 = arith.constant 0 : i32
    return %c0_i32, %c0_i32_0 : i32, i32
  }
  func.func @transform_6(%arg0: i32) -> (i32, i32) {
    %c0_i32 = arith.constant 0 : i32
    %c0_i32_0 = arith.constant 0 : i32
    %c0_i32_1 = arith.constant 0 : i32
    return %c0_i32, %c0_i32_0 : i32, i32
  }
  func.func @transform_7(%arg0: i32) -> (i32, i32) {
    %c0_i32 = arith.constant 0 : i32
    %c0_i32_0 = arith.constant 0 : i32
    return %c0_i32, %arg0 : i32, i32
  }
}

</mosaic_0001>

<bundles_post_ra>
// kernel: critic_forward.1
= control target key start
LH: loop header
LB: loop body
LE: loop exit
PB: predicated region body
PF: predicated region fallthrough
CT: control target
= control target key end

     0   :  { %v1238_v3 = vmov 0   ;;  %s1737_s0 = inlined_call_operand.vmem [shape: f32[128,128], index: 0, kind: input, shape index: {}]   ;;  %s1738_s6 = inlined_call_operand.<no memory space> [shape: f32[1,1], index: 6, kind: input, shape index: {}]   ;;  %s1739_s2 = inlined_call_operand.vmem [shape: f32[128,1], index: 2, kind: input, shape index: {}]   ;;  %s1740_s1 = inlined_call_operand.vmem [shape: f32[128,128], index: 1, kind: input, shape index: {}]   ;;  %s1741_s4 = inlined_call_operand.vmem [shape: f32[128,1], index: 4, kind: input, shape index: {}]   ;;  %s1742_s5 = inlined_call_operand.vmem [shape: f32[128,1], index: 5, kind: input, shape index: {}]   ;;  %s1743_s3 = inlined_call_operand.vmem [shape: f32[128,128], index: 3, kind: input, shape index: {}]   ;;  %s1744_s7 = inlined_call_operand.vmem [shape: f32[1,128], index: 7, kind: output, shape index: {}]  }
   0x1   :  { %v28_v0 = vld [vmem:[%s1737_s0] sm:$0xff]  ;;  %v29_v1 = vld [vmem:[%s1737_s0 + $0x8] sm:$0xff]  ;;  %v30_v2 = vld [vmem:[%s1737_s0 + $0x10] sm:$0xff]  ;;  %1172 = vset.pattern.permute.xlu0 %v1238_v3  ;;  %1173 = vset.pattern.permute.xlu1 %v1238_v3  ;;  %v12_v4 = vstv %s1738_s6 }
   0x2   :  { %v1107_v5 = vpack.c.bf16 %v29_v1, %v28_v0  ;;  %v31_v6 = vld [vmem:[%s1737_s0 + $0x18] sm:$0xff]  ;;  %13 = vst [vmem:[#allocation2] sm:$0x1] %v12_v4  ;;  %v32_v8 = vld [vmem:[%s1737_s0 + $0x20] sm:$0xff]  ;;  %v33_v9 = vld [vmem:[%s1737_s0 + $0x28] sm:$0xff] }
   0x3   :  { %v1111_v7 = vpack.c.bf16 %v31_v6, %v30_v2  ;;  %v60_v10 = vld [vmem:[%s1739_s2] sm:$0xff]  ;;  %v1115_v11 = vpack.c.bf16 %v33_v9, %v32_v8  ;;  %v61_v12 = vld [vmem:[%s1739_s2 + $0x8] sm:$0xff]  ;;  %v62_v13 = vld [vmem:[%s1739_s2 + $0x10] sm:$0xff] }
   0x4   :  { %1108 = vmatprep.subr.bf16.mxu0 %v1107_v5  ;;  %78 = vperm.xlu0 %1172, %v60_v10   ;;  %v34_v14 = vld [vmem:[%s1737_s0 + $0x30] sm:$0xff]  ;;  %v35_v15 = vld [vmem:[%s1737_s0 + $0x38] sm:$0xff]  ;;  %v44_v17 = vld [vmem:[%s1740_s1] sm:$0xff] }
   0x5   :  { %1110 = vmatpush3.bf16.msra.mxu0 %v1107_v5  ;;  %88 = vperm.xlu1 %1173, %v62_v13   ;;  %v63_v16 = vld [vmem:[%s1739_s2 + $0x18] sm:$0xff]  ;;  %v1119_v18 = vpack.c.bf16 %v35_v15, %v34_v14  ;;  %v64_v19 = vld [vmem:[%s1739_s2 + $0x20] sm:$0xff]  ;;  %v37_v21 = vld [vmem:[%s1737_s0 + $0x48] sm:$0xff] }
   0x6   :  { %1112 = vmatprep.subr.bf16.mxu0 %v1111_v7  ;;  %1027 = vmatprep.mubr.f32.mxu0 %v44_v17  ;;  %v36_v20 = vld [vmem:[%s1737_s0 + $0x40] sm:$0xff]  ;;  %v65_v22 = vld [vmem:[%s1739_s2 + $0x28] sm:$0xff]  ;;  %v66_v24 = vld [vmem:[%s1739_s2 + $0x30] sm:$0xff] }
   0x7   :  { %v1123_v23 = vpack.c.bf16 %v37_v21, %v36_v20  ;;  %v38_v25 = vld [vmem:[%s1737_s0 + $0x50] sm:$0xff]  ;;  %v39_v26 = vld [vmem:[%s1737_s0 + $0x58] sm:$0xff]  ;;  %v68_v29 = vld [vmem:[%s1739_s2 + $0x40] sm:$0xff] }
   0x8   :  { %83 = vperm.xlu0 %1172, %v61_v12   ;;  %v67_v27 = vld [vmem:[%s1739_s2 + $0x38] sm:$0xff]  ;;  %v1127_v28 = vpack.c.bf16 %v39_v26, %v38_v25  ;;  %v40_v30 = vld [vmem:[%s1737_s0 + $0x60] sm:$0xff]  ;;  %v41_v31 = vld [vmem:[%s1737_s0 + $0x68] sm:$0xff] }
   0x9   :  { %1114 = vmatpush3.bf16.msra.mxu0 %v1111_v7  ;;  %93 = vperm.xlu1 %1173, %v63_v16   ;;  %v69_v32 = vld [vmem:[%s1739_s2 + $0x48] sm:$0xff]  ;;  %v1131_v33 = vpack.c.bf16 %v41_v31, %v40_v30  ;;  %v70_v34 = vld [vmem:[%s1739_s2 + $0x50] sm:$0xff]  ;;  %v43_v36 = vld [vmem:[%s1737_s0 + $0x78] sm:$0xff] }
   0xa   :  { %1116 = vmatprep.subr.bf16.mxu0 %v1115_v11  ;;  %v42_v35 = vld [vmem:[%s1737_s0 + $0x70] sm:$0xff]  ;;  %v71_v37 = vld [vmem:[%s1739_s2 + $0x58] sm:$0xff]  ;;  %v72_v39 = vld [vmem:[%s1739_s2 + $0x60] sm:$0xff] }
   0xb   :  { %v1135_v38 = vpack.c.bf16 %v43_v36, %v42_v35  ;;  %v73_v40 = vld [vmem:[%s1739_s2 + $0x68] sm:$0xff]  ;;  %v74_v41 = vld [vmem:[%s1739_s2 + $0x70] sm:$0xff]  ;;  %v75_v42 = vld [vmem:[%s1739_s2 + $0x78] sm:$0xff] }
   0xc   :  { %98 = vperm.xlu0 %1172, %v64_v19   ;;  %v45_v43 = vld [vmem:[%s1740_s1 + $0x8] sm:$0xff]  ;;  %v46_v44 = vld [vmem:[%s1740_s1 + $0x10] sm:$0xff]  ;;  %v413_v45 = vld [vmem:[%s1741_s4] sm:$0xff] }
   0xd   :  { %1118 = vmatpush3.bf16.msra.mxu0 %v1115_v11  ;;  %103 = vperm.xlu1 %1173, %v65_v22   ;;  %v414_v46 = vld [vmem:[%s1741_s4 + $0x8] sm:$0xff]  ;;  %v47_v47 = vld [vmem:[%s1740_s1 + $0x18] sm:$0xff]  ;;  %v48_v48 = vld [vmem:[%s1740_s1 + $0x20] sm:$0xff] }
   0xe   :  { %1120 = vmatprep.subr.bf16.mxu0 %v1119_v18  ;;  %v415_v49 = vld [vmem:[%s1741_s4 + $0x10] sm:$0xff]  ;;  %v416_v50 = vld [vmem:[%s1741_s4 + $0x18] sm:$0xff]  ;;  %v49_v51 = vld [vmem:[%s1740_s1 + $0x28] sm:$0xff] }
   0xf   :  { %v50_v52 = vld [vmem:[%s1740_s1 + $0x30] sm:$0xff]  ;;  %v417_v53 = vld [vmem:[%s1741_s4 + $0x20] sm:$0xff]  ;;  %v418_v54 = vld [vmem:[%s1741_s4 + $0x28] sm:$0xff] }
  0x10   :  { %108 = vperm.xlu0 %1172, %v66_v24   ;;  %v51_v55 = vld [vmem:[%s1740_s1 + $0x38] sm:$0xff]  ;;  %v52_v56 = vld [vmem:[%s1740_s1 + $0x40] sm:$0xff]  ;;  %v419_v57 = vld [vmem:[%s1741_s4 + $0x30] sm:$0xff] }
  0x11   :  { %1122 = vmatpush3.bf16.msra.mxu0 %v1119_v18  ;;  %113 = vperm.xlu1 %1173, %v67_v27   ;;  %v420_v58 = vld [vmem:[%s1741_s4 + $0x38] sm:$0xff]  ;;  %v53_v59 = vld [vmem:[%s1740_s1 + $0x48] sm:$0xff]  ;;  %v54_v60 = vld [vmem:[%s1740_s1 + $0x50] sm:$0xff] }
  0x12   :  { %1124 = vmatprep.subr.bf16.mxu0 %v1123_v23  ;;  %v421_v61 = vld [vmem:[%s1741_s4 + $0x40] sm:$0xff]  ;;  %v422_v62 = vld [vmem:[%s1741_s4 + $0x48] sm:$0xff]  ;;  %v55_v63 = vld [vmem:[%s1740_s1 + $0x58] sm:$0xff] }
  0x13   :  { %v56_v0 = vld [vmem:[%s1740_s1 + $0x60] sm:$0xff]  ;;  %v423_v1 = vld [vmem:[%s1741_s4 + $0x50] sm:$0xff]  ;;  %v424_v2 = vld [vmem:[%s1741_s4 + $0x58] sm:$0xff] }
  0x14   :  { %118 = vperm.xlu0 %1172, %v68_v29   ;;  %v57_v3 = vld [vmem:[%s1740_s1 + $0x68] sm:$0xff]  ;;  %v58_v4 = vld [vmem:[%s1740_s1 + $0x70] sm:$0xff]  ;;  %v750_v5 = vld [vmem:[%s1742_s5] sm:$0xff] }
  0x15   :  { %1126 = vmatpush3.bf16.msra.mxu0 %v1123_v23  ;;  %123 = vperm.xlu1 %1173, %v69_v32   ;;  %v751_v6 = vld [vmem:[%s1742_s5 + $0x8] sm:$0xff]  ;;  %v59_v7 = vld [vmem:[%s1740_s1 + $0x78] sm:$0xff]  ;;  %v425_v8 = vld [vmem:[%s1741_s4 + $0x60] sm:$0xff] }
  0x16   :  { %1128 = vmatprep.subr.bf16.mxu0 %v1127_v28  ;;  %v752_v9 = vld [vmem:[%s1742_s5 + $0x10] sm:$0xff]  ;;  %v426_v10 = vld [vmem:[%s1741_s4 + $0x68] sm:$0xff]  ;;  %v753_v11 = vld [vmem:[%s1742_s5 + $0x18] sm:$0xff] }
  0x17   :  { %v427_v12 = vld [vmem:[%s1741_s4 + $0x70] sm:$0xff]  ;;  %v754_v13 = vld [vmem:[%s1742_s5 + $0x20] sm:$0xff]  ;;  %v428_v14 = vld [vmem:[%s1741_s4 + $0x78] sm:$0xff] }
  0x18   :  { %128 = vperm.xlu0 %1172, %v70_v34   ;;  %v755_v15 = vld [vmem:[%s1742_s5 + $0x28] sm:$0xff]  ;;  %v756_v16 = vld [vmem:[%s1742_s5 + $0x30] sm:$0xff]  ;;  %v757_v17 = vld [vmem:[%s1742_s5 + $0x38] sm:$0xff] }
  0x19   :  { %1130 = vmatpush3.bf16.msra.mxu0 %v1127_v28  ;;  %133 = vperm.xlu1 %1173, %v71_v37   ;;  %v758_v18 = vld [vmem:[%s1742_s5 + $0x40] sm:$0xff]  ;;  %v759_v19 = vld [vmem:[%s1742_s5 + $0x48] sm:$0xff]  ;;  %v760_v20 = vld [vmem:[%s1742_s5 + $0x50] sm:$0xff] }
  0x1a   :  { %1132 = vmatprep.subr.bf16.mxu0 %v1131_v33  ;;  %v761_v21 = vld [vmem:[%s1742_s5 + $0x58] sm:$0xff]  ;;  %v762_v22 = vld [vmem:[%s1742_s5 + $0x60] sm:$0xff]  ;;  %v763_v23 = vld [vmem:[%s1742_s5 + $0x68] sm:$0xff] }
  0x1b   :  { %v764_v24 = vld [vmem:[%s1742_s5 + $0x70] sm:$0xff]  ;;  %v765_v25 = vld [vmem:[%s1742_s5 + $0x78] sm:$0xff]  ;;  %v883_v26 = vld [vmem:[#allocation2] sm:$0x1] }
  0x1c   :  { %138 = vperm.xlu0 %1172, %v72_v39   ;;  %v397_v27 = vld [vmem:[%s1743_s3] sm:$0xff] }
  0x1d   :  { %1134 = vmatpush3.bf16.msra.mxu0 %v1131_v33  ;;  %143 = vperm.xlu1 %1173, %v73_v40  }
  0x1e   :  { %1136 = vmatprep.subr.bf16.mxu0 %v1135_v38  ;;  %1083 = vmatprep.mubr.f32.mxu1 %v397_v27 }
  0x20   :  { %148 = vperm.xlu0 %1172, %v74_v41  }
  0x21   :  { %1138 = vmatpush3.bf16.msra.mxu0 %v1135_v38  ;;  %153 = vperm.xlu1 %1173, %v75_v42  }
  0x24   :  { %1028 = vmatmul.mubr.f32.vlgmr.msra.gmra.mrb[0].mxu0 %v45_v43  ;;  %431 = vperm.xlu0 %1172, %v413_v45  }
  0x25   :  { %1030 = vmatprep.mubr.f32.mxu0 %v46_v44  ;;  %436 = vperm.xlu1 %1173, %v414_v46  }
  0x28   :  { %1031 = vmatmul.mubr.f32.gmra.mrb[2].mxu0 %v47_v47  ;;  %441 = vperm.xlu0 %1172, %v415_v49  }
  0x29   :  { %1033 = vmatprep.mubr.f32.mxu0 %v48_v48  ;;  %446 = vperm.xlu1 %1173, %v416_v50  }
  0x2c   :  { %1034 = vmatmul.mubr.f32.gmra.mrb[4].mxu0 %v49_v51  ;;  %451 = vperm.xlu0 %1172, %v417_v53  }
  0x2d   :  { %1036 = vmatprep.mubr.f32.mxu0 %v50_v52  ;;  %456 = vperm.xlu1 %1173, %v418_v54  }
  0x30   :  { %1037 = vmatmul.mubr.f32.gmra.mrb[6].mxu0 %v51_v55  ;;  %461 = vperm.xlu0 %1172, %v419_v57  }
  0x31   :  { %1039 = vmatprep.mubr.f32.mxu0 %v52_v56  ;;  %466 = vperm.xlu1 %1173, %v420_v58  }
  0x34   :  { %1040 = vmatmul.mubr.f32.gmra.mrb[8].mxu0 %v53_v59  ;;  %471 = vperm.xlu0 %1172, %v421_v61  }
  0x35   :  { %1042 = vmatprep.mubr.f32.mxu0 %v54_v60  ;;  %476 = vperm.xlu1 %1173, %v422_v62  }
  0x38   :  { %1043 = vmatmul.mubr.f32.gmra.mrb[10].mxu0 %v55_v63  ;;  %481 = vperm.xlu0 %1172, %v423_v1  }
  0x39   :  { %1045 = vmatprep.mubr.f32.mxu0 %v56_v0  ;;  %486 = vperm.xlu1 %1173, %v424_v2  }
  0x3c   :  { %1046 = vmatmul.mubr.f32.gmra.mrb[12].mxu0 %v57_v3  ;;  %768 = vperm.xlu0 %1172, %v750_v5  }
  0x3d   :  { %1048 = vmatprep.mubr.f32.mxu0 %v58_v4  ;;  %773 = vperm.xlu1 %1173, %v751_v6  }
  0x40   :  { %1049 = vmatmul.mubr.f32.gmra.mrb[14].mxu0 %v59_v7  ;;  %491 = vperm.xlu0 %1172, %v425_v8  }
  0x41   :  { %778 = vperm.xlu1 %1173, %v752_v9  }
  0x44   :  { %496 = vperm.xlu0 %1172, %v426_v10  }
  0x45   :  { %783 = vperm.xlu1 %1173, %v753_v11  }
  0x48   :  { %501 = vperm.xlu0 %1172, %v427_v12  }
  0x49   :  { %788 = vperm.xlu1 %1173, %v754_v13  }
  0x4c   :  { %506 = vperm.xlu0 %1172, %v428_v14  }
  0x4d   :  { %793 = vperm.xlu1 %1173, %v755_v15  }
  0x50   :  { %798 = vperm.xlu0 %1172, %v756_v16  }
  0x51   :  { %803 = vperm.xlu1 %1173, %v757_v17  }
  0x54   :  { %808 = vperm.xlu0 %1172, %v758_v18  }
  0x55   :  { %813 = vperm.xlu1 %1173, %v759_v19  }
  0x58   :  { %818 = vperm.xlu0 %1172, %v760_v20  }
  0x59   :  { %823 = vperm.xlu1 %1173, %v761_v21  }
  0x5c   :  { %828 = vperm.xlu0 %1172, %v762_v22  }
  0x5d   :  { %833 = vperm.xlu1 %1173, %v763_v23  }
  0x60   :  { %838 = vperm.xlu0 %1172, %v764_v24  }
  0x61   :  { %843 = vperm.xlu1 %1173, %v765_v25  }
  0x64   :  { %886 = vperm.xlu0 %1172, %v883_v26  }
  0x83   :  { %v79_v29 = vpop.permute.xlu0 %78 }
  0x84   :  { %v89_v28 = vpop.permute.xlu1 %88 }
  0x87   :  { %v84_v31 = vpop.permute.xlu0 %83 }
  0x88   :  { %v94_v30 = vpop.permute.xlu1 %93 }
  0x8b   :  { %v99_v33 = vpop.permute.xlu0 %98 }
  0x8c   :  { %v104_v32 = vpop.permute.xlu1 %103 }
  0x8f   :  { %v109_v42 = vpop.permute.xlu0 %108 }
  0x90   :  { %v114_v39 = vpop.permute.xlu1 %113 }
  0x93   :  { %v119_v57 = vpop.permute.xlu0 %118 }
  0x94   :  { %v124_v54 = vpop.permute.xlu1 %123 }
  0x97   :  { %v129_v7 = vpop.permute.xlu0 %128 }
  0x98   :  { %v134_v3 = vpop.permute.xlu1 %133 }
  0x9c   :  { %v144_v26 = vpop.permute.xlu1 %143 }
  0xf7   :  { %v1029_v34 = vpop.f32.mrb[0].mxu0 }
  0xf8   :  { %v228_v35 = vadd.f32 %v1029_v34, %v84_v31  ;;  %v222_v36 = vpop.f32.mrb[1].mxu0  ;;  %v139_v31 = vpop.permute.xlu0 %138 }
  0xf9   :  { %v223_v37 = vadd.f32 %v222_v36, %v79_v29 }
  0xfa   :  { %v318_v38 = vmin.f32 %v228_v35, 0.0  ;;  %vm302_vm0 = vcmp.gt.f32.partialorder %v228_v35, 0.0 }
  0xfb   :  { %v317_v40 = vmin.f32 %v223_v37, 0.0  ;;  %v1032_v41 = vpop.f32.mrb[2].mxu0  ;;  %vm301_vm1 = vcmp.gt.f32.partialorder %v223_v37, 0.0 }
  0xfc   :  { %v335_v43 = vmul.f32 1.442695, %v318_v38  ;;  %v1525_v44 = vadd.f32 %v1032_v41, %v94_v30  ;;  %v232_v45 = vpop.f32.mrb[3].mxu0 }
  0xfd   :  { %v333_v46 = vmul.f32 1.442695, %v317_v40  ;;  %v1527_v47 = vadd.f32 %v232_v45, %v89_v28 }
  0xfe   :  { %1174 = vpow2.f32 %v335_v43  ;;  %v320_v48 = vmin.f32 %v1525_v44, 0.0  ;;  %vm304_vm2 = vcmp.gt.f32.partialorder %v1525_v44, 0.0 }
  0xff   :  { %1176 = vpow2.f32 %v333_v46  ;;  %v319_v49 = vmin.f32 %v1527_v47, 0.0  ;;  %v1035_v50 = vpop.f32.mrb[4].mxu0  ;;  %vm303_vm3 = vcmp.gt.f32.partialorder %v1527_v47, 0.0 }
 0x100   :  { %v339_v51 = vmul.f32 1.442695, %v320_v48  ;;  %v1531_v52 = vadd.f32 %v1035_v50, %v104_v32  ;;  %v242_v53 = vpop.f32.mrb[5].mxu0  ;;  %v154_v50 = vpop.permute.xlu1 %153 }
 0x101   :  { %v337_v55 = vmul.f32 1.442695, %v319_v49  ;;  %v1533_v56 = vadd.f32 %v242_v53, %v99_v33 }
 0x102   :  { %1178 = vpow2.f32 %v339_v51  ;;  %v322_v58 = vmin.f32 %v1531_v52, 0.0  ;;  %vm306_vm4 = vcmp.gt.f32.partialorder %v1531_v52, 0.0 }
 0x103   :  { %1180 = vpow2.f32 %v337_v55  ;;  %v321_v59 = vmin.f32 %v1533_v56, 0.0  ;;  %v1038_v60 = vpop.f32.mrb[6].mxu0  ;;  %vm305_vm5 = vcmp.gt.f32.partialorder %v1533_v56, 0.0  ;;  %v149_v55 = vpop.permute.xlu0 %148 }
 0x104   :  { %v343_v61 = vmul.f32 1.442695, %v322_v58  ;;  %v1537_v62 = vadd.f32 %v1038_v60, %v114_v39  ;;  %v252_v63 = vpop.f32.mrb[7].mxu0 }
 0x105   :  { %v341_v0 = vmul.f32 1.442695, %v321_v59  ;;  %v1539_v1 = vadd.f32 %v252_v63, %v109_v42 }
 0x106   :  { %1182 = vpow2.f32 %v343_v61  ;;  %v324_v2 = vmin.f32 %v1537_v62, 0.0  ;;  %vm308_vm6 = vcmp.gt.f32.partialorder %v1537_v62, 0.0 }
 0x107   :  { %1184 = vpow2.f32 %v341_v0  ;;  %v323_v4 = vmin.f32 %v1539_v1, 0.0  ;;  %v1041_v5 = vpop.f32.mrb[8].mxu0  ;;  %vm307_vm7 = vcmp.gt.f32.partialorder %v1539_v1, 0.0 }
 0x108   :  { %v1175_v6 = vpop.eup %1174  ;;  %v347_v8 = vmul.f32 1.442695, %v324_v2  ;;  %v1543_v9 = vadd.f32 %v1041_v5, %v124_v54  ;;  %v262_v10 = vpop.f32.mrb[9].mxu0 }
 0x109   :  { %v1177_v11 = vpop.eup %1176  ;;  %v345_v12 = vmul.f32 1.442695, %v323_v4  ;;  %v1545_v13 = vadd.f32 %v262_v10, %v119_v57  ;;  %v900_v14 = vadd.f32 -1.0, %v1175_v6 }
 0x10a   :  { %1186 = vpow2.f32 %v347_v8  ;;  %v326_v15 = vmin.f32 %v1543_v9, 0.0  ;;  %v899_v16 = vadd.f32 -1.0, %v1177_v11  ;;  %vm310_vm8 = vcmp.gt.f32.partialorder %v1543_v9, 0.0 }
 0x10b   :  { %1188 = vpow2.f32 %v345_v12  ;;  %v325_v17 = vmin.f32 %v1545_v13, 0.0  ;;  %v1044_v18 = vpop.f32.mrb[10].mxu0  ;;  %v382_v19 = vsel %vm302_vm0, %v228_v35, %v900_v14  ;;  %vm309_vm9 = vcmp.gt.f32.partialorder %v1545_v13, 0.0 }
 0x10c   :  { %v1179_v20 = vpop.eup %1178  ;;  %v351_v21 = vmul.f32 1.442695, %v326_v15  ;;  %v1549_v22 = vadd.f32 %v1044_v18, %v134_v3  ;;  %v272_v23 = vpop.f32.mrb[11].mxu0  ;;  %v381_v24 = vsel %vm301_vm1, %v223_v37, %v899_v16 }
 0x10d   :  { %v1181_v25 = vpop.eup %1180  ;;  %v902_v27 = vadd.f32 -1.0, %v1179_v20  ;;  %v349_v28 = vmul.f32 1.442695, %v325_v17  ;;  %v1551_v29 = vadd.f32 %v272_v23, %v129_v7  ;;  %v1139_v30 = vpack.c.bf16 %v382_v19, %v381_v24 }
 0x10e   :  { %v901_v32 = vadd.f32 -1.0, %v1181_v25  ;;  %1190 = vpow2.f32 %v351_v21  ;;  %v328_v33 = vmin.f32 %v1549_v22, 0.0  ;;  %vm312_vm10 = vcmp.gt.f32.partialorder %v1549_v22, 0.0 }
 0x10f   :  { %1192 = vpow2.f32 %v349_v28  ;;  %v327_v34 = vmin.f32 %v1551_v29, 0.0  ;;  %v1047_v35 = vpop.f32.mrb[12].mxu0  ;;  %1140 = vmatprep.subr.bf16.mxu1 %v1139_v30  ;;  %v384_v36 = vsel %vm304_vm2, %v1525_v44, %v902_v27  ;;  %vm311_vm11 = vcmp.gt.f32.partialorder %v1551_v29, 0.0 }
 0x110   :  { %v1183_v37 = vpop.eup %1182  ;;  %v355_v38 = vmul.f32 1.442695, %v328_v33  ;;  %v1558_v39 = vadd.f32 %v1047_v35, %v144_v26  ;;  %v282_v40 = vpop.f32.mrb[13].mxu0  ;;  %1142 = vmatpush3.bf16.msra.mxu1 %v1139_v30  ;;  %v383_v41 = vsel %vm303_vm3, %v1527_v47, %v901_v32 }
 0x111   :  { %v1185_v42 = vpop.eup %1184  ;;  %v904_v43 = vadd.f32 -1.0, %v1183_v37  ;;  %v353_v45 = vmul.f32 1.442695, %v327_v34  ;;  %v1561_v46 = vadd.f32 %v282_v40, %v139_v31  ;;  %v1143_v48 = vpack.c.bf16 %v384_v36, %v383_v41  ;;  %v398_v36 = vld [vmem:[%s1743_s3 + $0x8] sm:$0xff]  ;;  %v399_v37 = vld [vmem:[%s1743_s3 + $0x10] sm:$0xff] }
 0x112   :  { %v903_v49 = vadd.f32 -1.0, %v1185_v42  ;;  %1194 = vpow2.f32 %v355_v38  ;;  %v330_v44 = vmin.f32 %v1558_v39, 0.0  ;;  %vm314_vm12 = vcmp.gt.f32.partialorder %v1558_v39, 0.0  ;;  %v400_v38 = vld [vmem:[%s1743_s3 + $0x18] sm:$0xff]  ;;  %v402_v40 = vld [vmem:[%s1743_s3 + $0x28] sm:$0xff]  ;;  %v403_v41 = vld [vmem:[%s1743_s3 + $0x30] sm:$0xff] }
 0x113   :  { %1196 = vpow2.f32 %v353_v45  ;;  %v329_v51 = vmin.f32 %v1561_v46, 0.0  ;;  %v1050_v53 = vpop.f32.mrb[14].mxu0  ;;  %1144 = vmatprep.subr.bf16.mxu1 %v1143_v48  ;;  %v386_v47 = vsel %vm306_vm4, %v1531_v52, %v904_v43  ;;  %vm313_vm13 = vcmp.gt.f32.partialorder %v1561_v46, 0.0  ;;  %v404_v42 = vld [vmem:[%s1743_s3 + $0x38] sm:$0xff]  ;;  %v405_v43 = vld [vmem:[%s1743_s3 + $0x40] sm:$0xff]  ;;  %v406_v45 = vld [vmem:[%s1743_s3 + $0x48] sm:$0xff] }
 0x114   :  { %v1187_v54 = vpop.eup %1186  ;;  %v359_v57 = vmul.f32 1.442695, %v330_v44  ;;  %v1568_v58 = vadd.f32 %v1050_v53, %v154_v50  ;;  %v292_v59 = vpop.f32.mrb[15].mxu0  ;;  %1146 = vmatpush3.bf16.msra.mxu1 %v1143_v48  ;;  %v385_v60 = vsel %vm305_vm5, %v1533_v56, %v903_v49  ;;  %v408_v48 = vld [vmem:[%s1743_s3 + $0x58] sm:$0xff]  ;;  %v409_v49 = vld [vmem:[%s1743_s3 + $0x60] sm:$0xff]  ;;  %v410_v44 = vld [vmem:[%s1743_s3 + $0x68] sm:$0xff] }
 0x115   :  { %v1189_v61 = vpop.eup %1188  ;;  %v906_v63 = vadd.f32 -1.0, %v1187_v54  ;;  %v357_v0 = vmul.f32 1.442695, %v329_v51  ;;  %v293_v2 = vadd.f32 %v292_v59, %v149_v55  ;;  %v1147_v3 = vpack.c.bf16 %v386_v47, %v385_v60  ;;  %v411_v50 = vld [vmem:[%s1743_s3 + $0x70] sm:$0xff]  ;;  %v412_v51 = vld [vmem:[%s1743_s3 + $0x78] sm:$0xff]  ;;  %v432_v53 = vpop.permute.xlu0 %431 }
 0x116   :  { %v905_v4 = vadd.f32 -1.0, %v1189_v61  ;;  %1198 = vpow2.f32 %v359_v57  ;;  %v332_v52 = vmin.f32 %v1568_v58, 0.0  ;;  %vm316_vm14 = vcmp.gt.f32.partialorder %v1568_v58, 0.0  ;;  %v437_v47 = vpop.permute.xlu1 %436 }
 0x117   :  { %1200 = vpow2.f32 %v357_v0  ;;  %v331_v5 = vmin.f32 %v293_v2, 0.0  ;;  %1148 = vmatprep.subr.bf16.mxu1 %v1147_v3  ;;  %v388_v6 = vsel %vm308_vm6, %v1537_v62, %v906_v63  ;;  %vm315_vm15 = vcmp.gt.f32.partialorder %v293_v2, 0.0 }
 0x118   :  { %v1191_v7 = vpop.eup %1190  ;;  %v363_v56 = vmul.f32 1.442695, %v332_v52  ;;  %1150 = vmatpush3.bf16.msra.mxu1 %v1147_v3  ;;  %v387_v8 = vsel %vm307_vm7, %v1539_v1, %v905_v4 }
 0x119   :  { %v1193_v10 = vpop.eup %1192  ;;  %v908_v11 = vadd.f32 -1.0, %v1191_v7  ;;  %v361_v12 = vmul.f32 1.442695, %v331_v5  ;;  %v1151_v14 = vpack.c.bf16 %v388_v6, %v387_v8  ;;  %v442_v54 = vpop.permute.xlu0 %441 }
 0x11a   :  { %v907_v15 = vadd.f32 -1.0, %v1193_v10  ;;  %1202 = vpow2.f32 %v363_v56  ;;  %v447_v55 = vpop.permute.xlu1 %446 }
 0x11b   :  { %1204 = vpow2.f32 %v361_v12  ;;  %1152 = vmatprep.subr.bf16.mxu1 %v1151_v14  ;;  %v390_v16 = vsel %vm310_vm8, %v1543_v9, %v908_v11 }
 0x11c   :  { %v1195_v62 = vpop.eup %1194  ;;  %1154 = vmatpush3.bf16.msra.mxu1 %v1151_v14  ;;  %v389_v17 = vsel %vm309_vm9, %v1545_v13, %v907_v15 }
 0x11d   :  { %v1197_v18 = vpop.eup %1196  ;;  %v910_v1 = vadd.f32 -1.0, %v1195_v62  ;;  %v1155_v19 = vpack.c.bf16 %v390_v16, %v389_v17  ;;  %v452_v57 = vpop.permute.xlu0 %451 }
 0x11e   :  { %v909_v20 = vadd.f32 -1.0, %v1197_v18 }
 0x11f   :  { %1156 = vmatprep.subr.bf16.mxu1 %v1155_v19  ;;  %v392_v21 = vsel %vm312_vm10, %v1549_v22, %v910_v1 }
 0x120   :  { %v1199_v23 = vpop.eup %1198  ;;  %1158 = vmatpush3.bf16.msra.mxu1 %v1155_v19  ;;  %v391_v24 = vsel %vm311_vm11, %v1551_v29, %v909_v20 }
 0x121   :  { %v1201_v9 = vpop.eup %1200  ;;  %v912_v25 = vadd.f32 -1.0, %v1199_v23  ;;  %v1159_v26 = vpack.c.bf16 %v392_v21, %v391_v24  ;;  %v462_v59 = vpop.permute.xlu0 %461 }
 0x122   :  { %v911_v13 = vadd.f32 -1.0, %v1201_v9 }
 0x123   :  { %1160 = vmatprep.subr.bf16.mxu1 %v1159_v26  ;;  %v394_v27 = vsel %vm314_vm12, %v1558_v39, %v912_v25  ;;  %v401_v39 = vld [vmem:[%s1743_s3 + $0x20] sm:$0xff] }
 0x124   :  { %v1203_v28 = vpop.eup %1202  ;;  %1162 = vmatpush3.bf16.msra.mxu1 %v1159_v26  ;;  %v393_v30 = vsel %vm313_vm13, %v1561_v46, %v911_v13  ;;  %v407_v46 = vld [vmem:[%s1743_s3 + $0x50] sm:$0xff] }
 0x125   :  { %v1205_v22 = vpop.eup %1204  ;;  %v914_v31 = vadd.f32 -1.0, %v1203_v28  ;;  %v1163_v32 = vpack.c.bf16 %v394_v27, %v393_v30  ;;  %v472_v61 = vpop.permute.xlu0 %471 }
 0x126   :  { %v913_v29 = vadd.f32 -1.0, %v1205_v22 }
 0x127   :  { %1164 = vmatprep.subr.bf16.mxu1 %v1163_v32  ;;  %v396_v33 = vsel %vm316_vm14, %v1568_v58, %v914_v31  ;;  %v457_v58 = vpop.permute.xlu1 %456 }
 0x128   :  { %1166 = vmatpush3.bf16.msra.mxu1 %v1163_v32  ;;  %v395_v34 = vsel %vm315_vm15, %v293_v2, %v913_v29 }
 0x129   :  { %v1167_v35 = vpack.c.bf16 %v396_v33, %v395_v34  ;;  %v1635_v0 = vpop.permute.xlu0 %481 }
 0x12b   :  { %1168 = vmatprep.subr.bf16.mxu1 %v1167_v35  ;;  %v467_v60 = vpop.permute.xlu1 %466 }
 0x12c   :  { %1170 = vmatpush3.bf16.msra.mxu1 %v1167_v35 }
 0x12d   :  { %v1639_v3 = vpop.permute.xlu0 %768 }
 0x12f   :  { %1084 = vmatmul.mubr.f32.vlgmr.msra.gmra.mrb[0].mxu1 %v398_v36  ;;  %v477_v63 = vpop.permute.xlu1 %476 }
 0x130   :  { %1086 = vmatprep.mubr.f32.mxu1 %v399_v37 }
 0x131   :  { %v1641_v8 = vpop.permute.xlu0 %491 }
 0x133   :  { %1087 = vmatmul.mubr.f32.gmra.mrb[2].mxu1 %v400_v38  ;;  %v1637_v2 = vpop.permute.xlu1 %486 }
 0x134   :  { %1089 = vmatprep.mubr.f32.mxu1 %v401_v39 }
 0x135   :  { %v1653_v24 = vpop.permute.xlu0 %496 }
 0x137   :  { %1090 = vmatmul.mubr.f32.gmra.mrb[4].mxu1 %v402_v40  ;;  %v774_v4 = vpop.permute.xlu1 %773 }
 0x138   :  { %1092 = vmatprep.mubr.f32.mxu1 %v403_v41 }
 0x139   :  { %v1666_v34 = vpop.permute.xlu0 %501 }
 0x13b   :  { %1093 = vmatmul.mubr.f32.gmra.mrb[6].mxu1 %v404_v42  ;;  %v1645_v16 = vpop.permute.xlu1 %778 }
 0x13c   :  { %1095 = vmatprep.mubr.f32.mxu1 %v405_v43 }
 0x13f   :  { %1096 = vmatmul.mubr.f32.gmra.mrb[8].mxu1 %v406_v45  ;;  %v1658_v13 = vpop.permute.xlu1 %783 }
 0x140   :  { %1098 = vmatprep.mubr.f32.mxu1 %v407_v46 }
 0x143   :  { %1099 = vmatmul.mubr.f32.gmra.mrb[10].mxu1 %v408_v48  ;;  %v1671_v42 = vpop.permute.xlu1 %788 }
 0x144   :  { %1101 = vmatprep.mubr.f32.mxu1 %v409_v49 }
 0x147   :  { %1102 = vmatmul.mubr.f32.gmra.mrb[12].mxu1 %v410_v44 }
 0x148   :  { %1104 = vmatprep.mubr.f32.mxu1 %v411_v50 }
 0x14b   :  { %1105 = vmatmul.mubr.f32.gmra.mrb[14].mxu1 %v412_v51 }
 0x202   :  { %v1085_v52 = vpop.f32.mrb[0].mxu1 }
 0x203   :  { %v581_v5 = vadd.f32 %v1085_v52, %v437_v47  ;;  %v575_v6 = vpop.f32.mrb[1].mxu1 }
 0x204   :  { %v576_v7 = vadd.f32 %v575_v6, %v432_v53 }
 0x205   :  { %v671_v56 = vmin.f32 %v581_v5, 0.0  ;;  %vm655_vm0 = vcmp.gt.f32.partialorder %v581_v5, 0.0 }
 0x206   :  { %v670_v10 = vmin.f32 %v576_v7, 0.0  ;;  %v1088_v11 = vpop.f32.mrb[2].mxu1  ;;  %vm654_vm1 = vcmp.gt.f32.partialorder %v576_v7, 0.0 }
 0x207   :  { %v688_v12 = vmul.f32 1.442695, %v671_v56  ;;  %v1643_v14 = vadd.f32 %v1088_v11, %v447_v55  ;;  %v585_v15 = vpop.f32.mrb[3].mxu1 }
 0x208   :  { %v686_v62 = vmul.f32 1.442695, %v670_v10  ;;  %v1647_v17 = vadd.f32 %v585_v15, %v442_v54 }
 0x209   :  { %1206 = vpow2.f32 %v688_v12  ;;  %v673_v18 = vmin.f32 %v1643_v14, 0.0  ;;  %vm657_vm2 = vcmp.gt.f32.partialorder %v1643_v14, 0.0 }
 0x20a   :  { %1208 = vpow2.f32 %v686_v62  ;;  %v672_v1 = vmin.f32 %v1647_v17, 0.0  ;;  %v1091_v19 = vpop.f32.mrb[4].mxu1  ;;  %vm656_vm3 = vcmp.gt.f32.partialorder %v1647_v17, 0.0 }
 0x20b   :  { %v692_v20 = vmul.f32 1.442695, %v673_v18  ;;  %v1651_v21 = vadd.f32 %v1091_v19, %v457_v58  ;;  %v595_v23 = vpop.f32.mrb[5].mxu1 }
 0x20c   :  { %v690_v9 = vmul.f32 1.442695, %v672_v1  ;;  %v1655_v25 = vadd.f32 %v595_v23, %v452_v57 }
 0x20d   :  { %1210 = vpow2.f32 %v692_v20  ;;  %v675_v26 = vmin.f32 %v1651_v21, 0.0  ;;  %vm659_vm4 = vcmp.gt.f32.partialorder %v1651_v21, 0.0 }
 0x20e   :  { %1212 = vpow2.f32 %v690_v9  ;;  %v674_v27 = vmin.f32 %v1655_v25, 0.0  ;;  %v1094_v28 = vpop.f32.mrb[6].mxu1  ;;  %vm658_vm5 = vcmp.gt.f32.partialorder %v1655_v25, 0.0 }
 0x20f   :  { %v696_v30 = vmul.f32 1.442695, %v675_v26  ;;  %v1661_v22 = vadd.f32 %v1094_v28, %v467_v60  ;;  %v605_v31 = vpop.f32.mrb[7].mxu1  ;;  %v507_v60 = vpop.permute.xlu0 %506 }
 0x210   :  { %v694_v32 = vmul.f32 1.442695, %v674_v27  ;;  %v1663_v29 = vadd.f32 %v605_v31, %v462_v59 }
 0x211   :  { %1214 = vpow2.f32 %v696_v30  ;;  %v677_v33 = vmin.f32 %v1661_v22, 0.0  ;;  %vm661_vm6 = vcmp.gt.f32.partialorder %v1661_v22, 0.0 }
 0x212   :  { %1216 = vpow2.f32 %v694_v32  ;;  %v676_v35 = vmin.f32 %v1663_v29, 0.0  ;;  %v1097_v36 = vpop.f32.mrb[8].mxu1  ;;  %vm660_vm7 = vcmp.gt.f32.partialorder %v1663_v29, 0.0 }
 0x213   :  { %v1207_v37 = vpop.eup %1206  ;;  %v700_v38 = vmul.f32 1.442695, %v677_v33  ;;  %v1669_v39 = vadd.f32 %v1097_v36, %v477_v63  ;;  %v615_v40 = vpop.f32.mrb[9].mxu1 }
 0x214   :  { %v1209_v41 = vpop.eup %1208  ;;  %v916_v43 = vadd.f32 -1.0, %v1207_v37  ;;  %v698_v45 = vmul.f32 1.442695, %v676_v35  ;;  %v1673_v46 = vadd.f32 %v615_v40, %v472_v61 }
 0x215   :  { %v915_v48 = vadd.f32 -1.0, %v1209_v41  ;;  %1218 = vpow2.f32 %v700_v38  ;;  %v679_v49 = vmin.f32 %v1669_v39, 0.0  ;;  %vm663_vm8 = vcmp.gt.f32.partialorder %v1669_v39, 0.0 }
 0x216   :  { %v735_v44 = vsel %vm655_vm0, %v581_v5, %v916_v43  ;;  %1220 = vpow2.f32 %v698_v45  ;;  %v678_v50 = vmin.f32 %v1673_v46, 0.0  ;;  %v1100_v51 = vpop.f32.mrb[10].mxu1  ;;  %vm662_vm9 = vcmp.gt.f32.partialorder %v1673_v46, 0.0 }
 0x217   :  { %v1211_v53 = vpop.eup %1210  ;;  %v847_v47 = vmul.f32 %v774_v4, %v735_v44  ;;  %v734_v54 = vsel %vm654_vm1, %v576_v7, %v915_v48  ;;  %v704_v55 = vmul.f32 1.442695, %v679_v49  ;;  %v1678_v57 = vadd.f32 %v1100_v51, %v1637_v2  ;;  %v625_v58 = vpop.f32.mrb[11].mxu1 }
 0x218   :  { %v1213_v59 = vpop.eup %1212  ;;  %v846_v61 = vmul.f32 %v1639_v3, %v734_v54  ;;  %v918_v63 = vadd.f32 -1.0, %v1211_v53  ;;  %v702_v52 = vmul.f32 1.442695, %v678_v50  ;;  %v1682_v5 = vadd.f32 %v625_v58, %v1635_v0  ;;  %v794_v4 = vpop.permute.xlu1 %793 }
 0x219   :  { %v917_v6 = vadd.f32 -1.0, %v1213_v59  ;;  %1222 = vpow2.f32 %v704_v55  ;;  %v681_v56 = vmin.f32 %v1678_v57, 0.0  ;;  %vm665_vm10 = vcmp.gt.f32.partialorder %v1678_v57, 0.0 }
 0x21a   :  { %v862_v7 = vadd.f32 %v847_v47, %v846_v61  ;;  %1224 = vpow2.f32 %v702_v52  ;;  %v1103_v2 = vpop.f32.mrb[12].mxu1  ;;  %v737_v3 = vsel %vm657_vm2, %v1643_v14, %v918_v63  ;;  %v680_v0 = vmin.f32 %v1682_v5, 0.0 }
 0x21b   :  { %v1215_v10 = vpop.eup %1214  ;;  %v736_v11 = vsel %vm656_vm3, %v1647_v17, %v917_v6  ;;  %v708_v12 = vmul.f32 1.442695, %v681_v56  ;;  %v635_v15 = vpop.f32.mrb[13].mxu1  ;;  %v1693_v19 = vadd.f32 %v1103_v2, %v1653_v24  ;;  %v849_v9 = vmul.f32 %v1658_v13, %v737_v3 }
 0x21c   :  { %v1217_v62 = vpop.eup %1216  ;;  %v848_v18 = vmul.f32 %v1645_v16, %v736_v11  ;;  %v920_v1 = vadd.f32 -1.0, %v1215_v10  ;;  %v706_v23 = vmul.f32 1.442695, %v680_v0  ;;  %v1696_v14 = vadd.f32 %v635_v15, %v1641_v8  ;;  %v799_v17 = vpop.permute.xlu0 %798 }
 0x21d   :  { %v919_v20 = vadd.f32 -1.0, %v1217_v62  ;;  %1226 = vpow2.f32 %v708_v12  ;;  %v683_v16 = vmin.f32 %v1693_v19, 0.0  ;;  %v804_v32 = vpop.permute.xlu1 %803  ;;  %vm664_vm11 = vcmp.gt.f32.partialorder %v1682_v5, 0.0 }
 0x21e   :  { %v863_v26 = vadd.f32 %v862_v7, %v848_v18  ;;  %v1106_v27 = vpop.f32.mrb[14].mxu1  ;;  %v739_v30 = vsel %vm659_vm4, %v1651_v21, %v920_v1  ;;  %1228 = vpow2.f32 %v706_v23  ;;  %v682_v38 = vmin.f32 %v1696_v14, 0.0 }
 0x21f   :  { %v1219_v28 = vpop.eup %1218  ;;  %v738_v24 = vsel %vm658_vm5, %v1655_v25, %v919_v20  ;;  %v645_v31 = vpop.f32.mrb[15].mxu1  ;;  %v712_v36 = vmul.f32 1.442695, %v683_v16  ;;  %v1706_v40 = vadd.f32 %v1106_v27, %v507_v60  ;;  %v851_v25 = vmul.f32 %v794_v4, %v739_v30 }
 0x220   :  { %v1221_v8 = vpop.eup %1220  ;;  %v850_v33 = vmul.f32 %v1671_v42, %v738_v24  ;;  %v864_v13 = vadd.f32 %v863_v26, %v849_v9  ;;  %v922_v35 = vadd.f32 -1.0, %v1219_v28  ;;  %v1709_v21 = vadd.f32 %v645_v31, %v1666_v34  ;;  %v809_v44 = vpop.permute.xlu0 %808 }
 0x221   :  { %v921_v37 = vadd.f32 -1.0, %v1221_v8  ;;  %1230 = vpow2.f32 %v712_v36  ;;  %v710_v48 = vmul.f32 1.442695, %v682_v38  ;;  %v685_v34 = vmin.f32 %v1706_v40, 0.0  ;;  %v814_v55 = vpop.permute.xlu1 %813 }
 0x222   :  { %v865_v41 = vadd.f32 %v864_v13, %v850_v33  ;;  %v741_v42 = vsel %vm661_vm6, %v1661_v22, %v922_v35  ;;  %v684_v54 = vmin.f32 %v1709_v21, 0.0  ;;  %vm667_vm12 = vcmp.gt.f32.partialorder %v1693_v19, 0.0 }
 0x223   :  { %v1223_v43 = vpop.eup %1222  ;;  %v740_v45 = vsel %vm660_vm7, %v1663_v29, %v921_v37  ;;  %1232 = vpow2.f32 %v710_v48  ;;  %v853_v58 = vmul.f32 %v804_v32, %v741_v42  ;;  %v716_v22 = vmul.f32 1.442695, %v685_v34 }
 0x224   :  { %v1225_v49 = vpop.eup %1224  ;;  %v852_v50 = vmul.f32 %v799_v17, %v740_v45  ;;  %v866_v51 = vadd.f32 %v865_v41, %v851_v25  ;;  %v924_v53 = vadd.f32 -1.0, %v1223_v43  ;;  %v714_v63 = vmul.f32 1.442695, %v684_v54  ;;  %v819_v7 = vpop.permute.xlu0 %818 }
 0x225   :  { %v923_v47 = vadd.f32 -1.0, %v1225_v49  ;;  %1234 = vpow2.f32 %v716_v22  ;;  %v824_v12 = vpop.permute.xlu1 %823  ;;  %vm666_vm13 = vcmp.gt.f32.partialorder %v1696_v14, 0.0  ;;  %vm669_vm14 = vcmp.gt.f32.partialorder %v1706_v40, 0.0 }
 0x226   :  { %v867_v59 = vadd.f32 %v866_v51, %v852_v50  ;;  %v743_v60 = vsel %vm663_vm8, %v1669_v39, %v924_v53  ;;  %1236 = vpow2.f32 %v714_v63  ;;  %vm668_vm15 = vcmp.gt.f32.partialorder %v1709_v21, 0.0 }
 0x227   :  { %v1227_v29 = vpop.eup %1226  ;;  %v742_v61 = vsel %vm662_vm9, %v1673_v46, %v923_v47  ;;  %v855_v2 = vmul.f32 %v814_v55, %v743_v60  ;;  %v889_v38 = vlaneseq }
 0x228   :  { %v854_v52 = vmul.f32 %v809_v44, %v742_v61  ;;  %v868_v6 = vadd.f32 %v867_v59, %v853_v58  ;;  %v926_v56 = vadd.f32 -1.0, %v1227_v29  ;;  %v1229_v4 = vpop.eup %1228  ;;  %v829_v23 = vpop.permute.xlu0 %828 }
 0x229   :  { %v925_v3 = vadd.f32 -1.0, %v1229_v4  ;;  %v834_v16 = vpop.permute.xlu1 %833  ;;  %v890_v43 = vshrl.u32 %v889_v38, 7 }
 0x22a   :  { %v869_v10 = vadd.f32 %v868_v6, %v854_v52  ;;  %v745_v39 = vsel %vm665_vm10, %v1678_v57, %v926_v56 }
 0x22b   :  { %v1231_v11 = vpop.eup %1230  ;;  %v744_v46 = vsel %vm664_vm11, %v1682_v5, %v925_v3  ;;  %v857_v1 = vmul.f32 %v824_v12, %v745_v39  ;;  %v891_v48 = vsub.s32 0, %v890_v43 }
 0x22c   :  { %v870_v0 = vadd.f32 %v869_v10, %v855_v2  ;;  %v856_v15 = vmul.f32 %v819_v7, %v744_v46  ;;  %v928_v62 = vadd.f32 -1.0, %v1231_v11  ;;  %v839_v32 = vpop.permute.xlu0 %838 }
 0x22d   :  { %v1233_v18 = vpop.eup %1232 }
 0x22e   :  { %v871_v20 = vadd.f32 %v870_v0, %v856_v15  ;;  %v927_v17 = vadd.f32 -1.0, %v1233_v18  ;;  %v747_v27 = vsel %vm667_vm12, %v1693_v19, %v928_v62  ;;  %v844_v19 = vpop.permute.xlu1 %843 }
 0x22f   :  { %v1235_v26 = vpop.eup %1234  ;;  %v859_v31 = vmul.f32 %v834_v16, %v747_v27 }
 0x230   :  { %v872_v9 = vadd.f32 %v871_v20, %v857_v1  ;;  %v746_v57 = vsel %vm666_vm13, %v1696_v14, %v927_v17  ;;  %v1237_v5 = vpop.eup %1236  ;;  %v930_v30 = vadd.f32 -1.0, %v1235_v26  ;;  %v887_v44 = vpop.permute.xlu0 %886 }
 0x231   :  { %v858_v28 = vmul.f32 %v829_v23, %v746_v57  ;;  %v929_v24 = vadd.f32 -1.0, %v1237_v5  ;;  %v892_v51 = vrot.slane %v887_v44, %v891_v48 }
 0x232   :  { %v749_v33 = vsel %vm669_vm14, %v1706_v40, %v930_v30 }
 0x233   :  { %v873_v8 = vadd.f32 %v872_v9, %v858_v28  ;;  %v748_v13 = vsel %vm668_vm15, %v1709_v21, %v929_v24  ;;  %v861_v37 = vmul.f32 %v844_v19, %v749_v33 }
 0x234   :  { %v860_v35 = vmul.f32 %v839_v32, %v748_v13 }
 0x235   :  { %v874_v36 = vadd.f32 %v873_v8, %v859_v31 }
 0x237   :  { %v875_v14 = vadd.f32 %v874_v36, %v860_v35 }
 0x239   :  { %v876_v25 = vadd.f32 %v875_v14, %v861_v37 }
 0x23b   :  { %v877_v41 = vrot.slane %v876_v25, 4 }
 0x23d   :  { %v878_v42 = vadd.f32 %v877_v41, %v876_v25 }
 0x23f   :  { %v879_v45 = vrot.slane %v878_v42, 2 }
 0x241   :  { %v880_v49 = vadd.f32 %v879_v45, %v878_v42 }
 0x243   :  { %v881_v50 = vrot.slane %v880_v49, 1 }
 0x245   :  { %v882_v53 = vadd.f32 %v881_v50, %v880_v49 }
 0x247   :  { %v893_v40 = vadd.f32 %v892_v51, %v882_v53 }
 0x249   :  { %894 = vst [vmem:[%s1744_s7] sm:$0x1] %v893_v40 }

</bundles_post_ra>
